<compile_context>
chip_gen: v7x
topology: tpu7x:2x2x1
jax: 0.10.0
libtpu: 0.0.40
codegen_flags: <defaults>
</compile_context>

<pallas_src>
import functools

import jax
import jax.numpy as jnp
from jax import lax
from jax.experimental import pallas as pl
from jax.experimental.pallas import tpu as pltpu


def _random_crop_kernel(tl_ref, img_ref, out_img_ref):
    # tl_ref: SMEM int32[B, 2] = per-sample [top, left] (scalar prefetch)
    b = pl.program_id(0)
    top = tl_ref[b, 0]
    left = tl_ref[b, 1]

    C, H, W = img_ref.shape
    _, NH, NW = out_img_ref.shape

    # --- Row crop: dynamic slice on the sublane (H) axis — pure data movement,
    # no MXU work needed on this axis.
    rows = img_ref[:, pl.ds(top, NH), :]                       # (C, NH, W)

    # --- Column crop: lane-axis dynamic offset handled with a single
    # channel-fused one-hot selection matmul.
    # S_wT[w, s] = (w == s + left), shape (W, NW) (already "transposed").
    f32 = jnp.float32
    w_idx = lax.broadcasted_iota(jnp.int32, (W, NW), 0)
    s_idx = lax.broadcasted_iota(jnp.int32, (W, NW), 1)
    S_wT = (w_idx == s_idx + left).astype(f32)

    rows_2d = rows.reshape(C * NH, W).astype(f32)              # (C*NH, W)
    out_2d = jnp.dot(rows_2d, S_wT, preferred_element_type=f32)  # (C*NH, NW)
    out_img_ref[...] = out_2d.reshape(C, NH, NW).astype(out_img_ref.dtype)


@functools.partial(jax.jit, static_argnames=("output_size",))
def random_crop(image, landmarks, top_left, output_size):
    """image: (B, C, H, W); landmarks: (B, N, 2); top_left: int32[B, 2]."""
    B, C, H, W = image.shape
    NH, NW = output_size
    assert NH <= H and NW <= W  # static sanity check (trace time)

    grid_spec = pltpu.PrefetchScalarGridSpec(
        num_scalar_prefetch=1,
        grid=(B,),
        in_specs=[
            # Batch dim squeezed out; one full image per grid step.
            pl.BlockSpec((None, C, H, W), lambda b, tl: (b, 0, 0, 0)),
        ],
        out_specs=pl.BlockSpec((None, C, NH, NW), lambda b, tl: (b, 0, 0, 0)),
    )

    out_img = pl.pallas_call(
        _random_crop_kernel,
        out_shape=jax.ShapeDtypeStruct((B, C, NH, NW), image.dtype),
        grid_spec=grid_spec,
        compiler_params=pltpu.CompilerParams(
            dimension_semantics=("parallel",)),
    )(top_left, image)

    # landmarks - [top, left]: a (B, N, 2) subtract is cheaper as a plain JAX
    # op than as an extra masked-store output of the kernel.
    out_lm = landmarks - top_left[:, None, :].astype(landmarks.dtype)
    return out_img, out_lm


if __name__ == "__main__":
    key = jax.random.PRNGKey(0)
    k_img, k_lm, k_top, k_left = jax.random.split(key, 4)

    B, C, H, W = 2, 4, 16, 16
    NH, NW = 8, 8          # output_size
    N = 8                  # number of landmarks

    image = jax.random.uniform(k_img, (B, C, H, W), dtype=jnp.float32)
    landmarks = jax.random.uniform(k_lm, (B, N, 2), dtype=jnp.float32) * H

    # Deterministic replacement for np.random.randint(0, h - new_h) etc.
    # (clamped so minval < maxval even if H == NH / W == NW).
    top = jax.random.randint(k_top, (B,), 0, max(1, H - NH), dtype=jnp.int32)
    left = jax.random.randint(k_left, (B,), 0, max(1, W - NW), dtype=jnp.int32)
    top_left = jnp.stack([top, left], axis=-1).astype(jnp.int32)   # (B, 2)

    out_img, out_lm = random_crop(image, landmarks, top_left, (NH, NW))
    jax.block_until_ready((out_img, out_lm))

    # Reference (plain JAX) check of the forward semantics.
    ref_img = jnp.stack([
        lax.dynamic_slice(image[b], (0, top[b], left[b]), (C, NH, NW))
        for b in range(B)
    ])
    ref_lm = landmarks - top_left[:, None, :].astype(landmarks.dtype)
    assert out_img.shape == (B, C, NH, NW) and out_img.dtype == image.dtype
    assert out_lm.shape == (B, N, 2) and out_lm.dtype == landmarks.dtype
    assert jnp.allclose(out_img, ref_img, atol=1e-5)
    assert jnp.allclose(out_lm, ref_lm, atol=1e-5)

    print("KERNEL_OK")
</pallas_src>

<mosaic_0001>
module attributes {stable_mosaic.version = 11 : i64} {
  func.func @_random_crop_kernel(%arg0: i32, %arg1: memref<2x2xi32, #tpu.memory_space<smem>>, %arg2: memref<1x4x16x16xf32, #tpu.memory_space<vmem>>, %arg3: memref<1x4x8x8xf32, #tpu.memory_space<vmem>>) attributes {dimension_semantics = [#tpu.dimension_semantics<parallel>], iteration_bounds = array<i64: 2>, scalar_prefetch = 1 : i64, scratch_operands = 0 : i64, tpu.core_type = #tpu.core_type<tc>, window_params = [{transform_indices = @transform_0, window_bounds = array<i64: 1, 4, 16, 16>}, {transform_indices = @transform_1, window_bounds = array<i64: 1, 4, 8, 8>}]} {
    %0 = arith.index_cast %arg0 : i32 to index
    %c0 = arith.constant 0 : index
    %1 = memref.load %arg1[%0, %c0] : memref<2x2xi32, #tpu.memory_space<smem>>
    %2 = arith.index_cast %arg0 : i32 to index
    %c1 = arith.constant 1 : index
    %3 = memref.load %arg1[%2, %c1] : memref<2x2xi32, #tpu.memory_space<smem>>
    %c0_0 = arith.constant 0 : index
    %c0_1 = arith.constant 0 : index
    %4 = arith.index_cast %1 : i32 to index
    %c0_2 = arith.constant 0 : index
    %5 = vector.load %arg2[%c0_0, %c0_1, %4, %c0_2] : memref<1x4x16x16xf32, #tpu.memory_space<vmem>>, vector<1x4x8x16xf32>
    %6 = vector.shape_cast %5 : vector<1x4x8x16xf32> to vector<4x8x16xf32>
    %7 = tpu.iota {dimensions = array<i32: 0>} : vector<16x8xi32>
    %8 = tpu.iota {dimensions = array<i32: 1>} : vector<16x8xi32>
    %9 = vector.broadcast %3 : i32 to vector<16x8xi32>
    %10 = arith.addi %8, %9 : vector<16x8xi32>
    %11 = arith.cmpi eq, %7, %10 : vector<16x8xi32>
    %12 = arith.extui %11 : vector<16x8xi1> to vector<16x8xi32>
    %13 = arith.sitofp %12 : vector<16x8xi32> to vector<16x8xf32>
    %14 = vector.shape_cast %6 : vector<4x8x16xf32> to vector<32x16xf32>
    %cst = arith.constant dense<0.000000e+00> : vector<32x8xf32>
    %15 = tpu.matmul %14, %13, %cst {dimension_numbers = #tpu.dot_dimension_numbers<[1], [0], [0], [1], [0, 0, 1, 1], [], []>} : vector<32x16xf32>, vector<16x8xf32>, vector<32x8xf32> -> vector<32x8xf32>
    %16 = vector.shape_cast %15 : vector<32x8xf32> to vector<4x8x8xf32>
    %c0_3 = arith.constant 0 : index
    %c0_4 = arith.constant 0 : index
    %c0_5 = arith.constant 0 : index
    %c0_6 = arith.constant 0 : index
    %17 = vector.load %arg3[%c0_3, %c0_4, %c0_5, %c0_6] : memref<1x4x8x8xf32, #tpu.memory_space<vmem>>, vector<1x4x8x8xf32>
    %18 = vector.shape_cast %17 : vector<1x4x8x8xf32> to vector<4x8x8xf32>
    %19 = vector.shape_cast %16 : vector<4x8x8xf32> to vector<1x4x8x8xf32>
    tpu.vector_store %arg3[%c0_3, %c0_4, %c0_5, %c0_6], %19 {strides = array<i32>} : memref<1x4x8x8xf32, #tpu.memory_space<vmem>>, vector<1x4x8x8xf32>,
    return
  }
  func.func @transform_0(%arg0: i32, %arg1: memref<2x2xi32, #tpu.memory_space<smem>>) -> (i32, i32, i32, i32) {
    %c0_i32 = arith.constant 0 : i32
    %c0_i32_0 = arith.constant 0 : i32
    %c0_i32_1 = arith.constant 0 : i32
    %c0_i32_2 = arith.constant 0 : i32
    return %arg0, %c0_i32, %c0_i32_0, %c0_i32_1 : i32, i32, i32, i32
  }
  func.func @transform_1(%arg0: i32, %arg1: memref<2x2xi32, #tpu.memory_space<smem>>) -> (i32, i32, i32, i32) {
    %c0_i32 = arith.constant 0 : i32
    %c0_i32_0 = arith.constant 0 : i32
    %c0_i32_1 = arith.constant 0 : i32
    %c0_i32_2 = arith.constant 0 : i32
    return %arg0, %c0_i32, %c0_i32_0, %c0_i32_1 : i32, i32, i32, i32
  }
}

</mosaic_0001>

<bundles_post_ra>
// kernel: random_crop.1
= control target key start
LH: loop header
LB: loop body
LE: loop exit
PB: predicated region body
PF: predicated region fallthrough
CT: control target
= control target key end

     0   :  { %s760_s0 = inlined_call_operand.vmem [shape: s32[2,2], index: 0, kind: input, shape index: {}]   ;;  %s761_s1 = inlined_call_operand.hbm [shape: f32[2,4,16,16], index: 1, kind: input, shape index: {}]   ;;  %s762_s2 = inlined_call_operand.hbm [shape: f32[2,4,8,8], index: 2, kind: output, shape index: {}]  }
   0x1   :  { %s7_s11 = sshll.u32 %s760_s0, 4  ;;  %s8_s11 = int_to_ptr.vmem [resolvable:$true] %s7_s11 }
   0x2   :  { %s454_s12 = scalar_lea.vmem %s8_s11, 32  ;;  %p459_p1 = scmp.lt.s32.totalorder %s8_s11, %s8_s11 }
   0x3   :  { %p455_p0 = scmp.ne.s32.totalorder %s8_s11, %s454_s12  ;;  %p460_p2 = scmp.lt.s32.totalorder %s454_s12, %s454_s12 }
   0x5   :  { %p461_p3 = por %p460_p2, %p459_p1 }
   0x7   :  { %p462_p4 = pnand %p461_p3, %p455_p0 }
   0x9   :  { %465 = shalt.err (!%p462_p4)  }
   0xa   :  { %s566_s13 = smov [#allocation3]  }
   0xb   :  { %10 = dma.vmem_to_smem %s8_s11, 32, %s566_s13, [#allocation2] }
   0xc   :  { %540 = dma.done.wait [#allocation2], 32 }
   0xd   :  { %541 = vsyncadd [#allocation2], 4294967264 }
   0xe   :  { %12 = sfence }
   0xf   :  { %13 = vsyncpa [#allocation5], 0 }
  0x10   :  { %15 = vsyncpa [#allocation5 + $0x1], 0 }
  0x11   :  { %16 = vsyncpa [#allocation6], 0 }
  0x12   :  { %18 = vsyncpa [#allocation6 + $0x1], 0  ;;  %s592_s14 = smov 0   ;;  %s594_s0 = smov 0  }
  0x13   :  { %s596_s15 = smov 0   ;;  %s598_s16 = smov 0  }
  0x14 LB: > { %s613_s17 = sadd.s32 4294967295, %s564_s16   ;;  %s355_s18 = sadd.s32 4294967294, %s564_s16   ;;  %s564_s16 = sphi %s598_s16, %s775_s16   ;;  %s560_s15 = sphi %s596_s15, %s774_s15   ;;  %s556_s0 = sphi %s594_s0, %s773_s0   ;;  %s552_s14 = sphi %s592_s14, %s772_s14  }
  0x15   : > { %s617_s19 = sadd.s32 1, %s564_s16   ;;  %s31_s20 = sadd.s32 1, %s560_s15 }
  0x16   : > { %s28_s21 = ssub.s32 %s564_s16, %s617_s19  ;;  %p38_p5 = scmp.ne.s32.totalorder %s560_s15, %s556_s0 }
  0x17   : > { %p29_p6 = scmp.eq.s32.totalorder %s28_s21, 0  ;;  %p39_p7 = scmp.eq.s32.totalorder %s564_s16, 0 }
  0x18   : > { %p44_p8 = scmp.ne.s32.totalorder %s556_s0, %s552_s14  ;;  %p45_p9 = scmp.eq.s32.totalorder %s613_s17, 0 }
  0x19   : > { %s629_s22 = scalar_select %p29_p6, %s560_s15, %s31_s20  }
  0x1a   : > { %p631_p10 = por %p39_p7, %p38_p5  ;;  %p635_p11 = por %p45_p9, %p44_p8 }
  0x1b   : > { %p68_p12 = scmp.eq.s32.totalorder %s613_s17, 1  ;;  %p74_p13 = scmp.eq.s32.totalorder %s355_s18, 1 }
  0x1c   : > { %p414_p1 = scmp.lt.s32.totalorder %s564_s16, 2  ;;  %s94_s27 = sand.u32 1, %s560_s15  }
  0x1d   : > { %p642_p2 = por %p68_p12, %p38_p5  ;;  %p646_p3 = por %p74_p13, %p44_p8 }
  0x1e   : > { %s378_s28 = sshll.u32 %s564_s16, 10  ;;  %s358_s29 = sshll.u32 %s94_s27, 6 }
  0x1f   : > { %s766_s25 = scalar_select %p642_p2, 1, 0 }
  0x20   : > { %s767_s26 = scalar_select %p646_p3, 1, 0 }
  0x21   : > { %s655_s4 = scalar_lea.hbm %s761_s1, %s378_s28  ;;  %s98_s5 = scalar_lea.vmem [#allocation4], %s358_s29 }
  0x22   : > { %s105_s6 = sshll.u32 %s98_s5, 4  ;;  %p659_p4 = pnand %p414_p1, %p631_p10  ;;  %s663_s6 = int_to_ptr.vmem [resolvable:$true] %s105_s6 }
  0x23   : > { %s665_s8 = scalar_lea.sflag [#allocation5], %s94_s27  ;;  %s466_s9 = scalar_lea.hbm %s655_s4, 1024 }
  0x24   : > { %p467_p5 = scmp.ne.s32.totalorder %s655_s4, %s466_s9  ;;  %p468_p6 = pneg %p659_p4 }
  0x25   : > { %s471_s12 = scalar_lea.hbm %s761_s1, 2048  ;;  %p472_p9 = scmp.lt.u32.totalorder %s655_s4, %s761_s1 }
  0x26   : > { %p469_p7 = pnand %p468_p6, %p467_p5  ;;  %p473_p10 = scmp.lt.u32.totalorder %s471_s12, %s466_s9 }
  0x27   : > { %p475_p13 = scmp.lt.u32.totalorder %s466_s9, %s655_s4 }
  0x28   : > { %p470_p8 = pneg %p469_p7  ;;  %p474_p12 = por %p473_p10, %p472_p9 }
  0x2a   : > { %p476_p1 = por %p475_p13, %p474_p12 }
  0x2c   : > { %p477_p0 = pnand %p476_p1, %p470_p8 }
  0x2e   : > { %480 = shalt.err (!%p477_p0)
}
  0x2f   : > { %s481_s20 = scalar_lea.vmem %s663_s6, 1024  ;;  %s567_s21 = smov [#allocation4]  }
  0x30   : > { %p482_p5 = scmp.ne.s32.totalorder %s663_s6, %s481_s20  ;;  %s486_s23 = sshll.u32 %s567_s21, 4  ;;  %s487_s23 = int_to_ptr.vmem [resolvable:$false] %s486_s23 }
  0x31   : > { %s488_s27 = scalar_lea.vmem %s487_s23, 2048  ;;  %p489_p2 = scmp.lt.s32.totalorder %s663_s6, %s487_s23 }
  0x32   : > { %p484_p7 = pnand %p482_p5, %p468_p6  ;;  %p490_p9 = scmp.lt.s32.totalorder %s488_s27, %s481_s20 }
  0x34   : > { %p485_p3 = pneg %p484_p7  ;;  %p491_p10 = por %p490_p9, %p489_p2 }
  0x36   : > { %p492_p12 = pnand %p491_p10, %p485_p3 }
  0x38   : > { %495 = shalt.err (!%p492_p12)
}
  0x39   : > { %s568_s28 = smov 128   ;;  %s569_s29 = smov 8  }
  0x3a   : > { %409 = dma.hbm_to_vmem [thread:$0]  (!%p659_p4), %s655_s4, 1024, %s663_s6, %s665_s8, %s568_s28, %s568_s28, %s569_s29  }
  0x3b   : > { %p361_p0 = scmp.ge.s32.totalorder %s564_s16, 1  ;;  %p113_p6 = scmp.lt.s32.totalorder %s564_s16, 3 }
  0x3d   : > { %p114_p8 = pnand %p361_p0, %p113_p6 }
  0x3e   : > { %s696_s30 = sand.u32 (!%p114_p8), 1, %s556_s0  }
  0x3f   : > { %117 = sbr.rel (%p114_p8) target bundleno = 316 (0x13c), region = 24  ;;  %s362_s3 = sshll.u32 (!%p114_p8), %s696_s30, 6 }
  0x40   : > { %s120_s5 = scalar_lea.sflag (!%p114_p8), [#allocation5], %s696_s30  ;;  %s123_s9 = scalar_lea.vmem (!%p114_p8), [#allocation4], %s362_s3 }
  0x46   : > { %543 = dma.done.wait (%p635_p11), %s120_s5, 1024  }
  0x47   : > { %545 = vsyncadd (%p635_p11), %s120_s5, 4294966272  ;;  %s364_s4 = sshll.u32 %s613_s17, 7  ;;  %v151_v0 = vlaneseq  ;;  %vm164_vm0 = vcmask 130048   ;;  %v570_v8 = vmov 1.0|1.0   ;;  %s363_s24 = sshll.u32 %s696_s30, 5 }
  0x48   : > { %s144_s6 = sadd.s32 1, %s364_s4  ;;  %s143_s7 = sld [smem:[#allocation3 + %s364_s4]]  ;;  %vm262_vm4 = vcmask 64512  }
  0x49   : > { %s145_s8 = sld [smem:[#allocation3 + %s144_s6]]  ;;  %v152_v1 = vshrl.u32 %v151_v0, 7  ;;  %v155_v2 = vand.u32 127, %v151_v0  ;;  %s141_s11 = scalar_lea.vmem [#allocation7], %s363_s24 }
  0x4a   : > { %s281_s12 = sshll.u32 %s141_s11, 4  ;;  %s379_s13 = sshll.u32 %s613_s17, 9  ;;  %s711_s12 = int_to_ptr.vmem [resolvable:$true] %s281_s12 }
  0x4b   : > { %v153_v3 = vadd.s32 8, %v152_v1  ;;  %s716_s21 = scalar_lea.hbm %s762_s2, %s379_s13  ;;  %s268_s17 = scalar_lea.sflag [#allocation6], %s696_s30 }
  0x4c   : > { %s496_s23 = scalar_lea.vmem %s711_s12, 512  ;;  %p769_p2 = scmp.ne.s32.totalorder %s766_s25, 0 }
  0x4d   : > { %p497_p11 = scmp.ne.s32.totalorder %s711_s12, %s496_s23  ;;  %s571_s27 = smov [#allocation7]  }
  0x4e   : > { %s146_s10 = scalar_lea.vmem %s123_s9, %s143_s7 [#allocation4]  ;;  %s500_s28 = sshll.u32 %s571_s27, 4  ;;  %s501_s28 = int_to_ptr.vmem [resolvable:$false] %s500_s28 }
  0x4f   : > { %v156_v4 = vstv %s145_s8  ;;  %v147_v5 = vld [vmem:[%s146_s10] sm:$0xff]  ;;  %v148_v9 = vld [vmem:[%s146_s10 + $0x10] sm:$0xff]  ;;  %p498_p3 = pnand %p497_p11, %p769_p2  ;;  %s502_s29 = scalar_lea.vmem %s501_s28, 1024 }
  0x50   : > { %v149_v6 = vld [vmem:[%s146_s10 + $0x20] sm:$0xff]  ;;  %v157_v7 = vadd.s32 %v156_v4, %v155_v2  ;;  %390 = vmatprep.mubr.msk.f32.mxu0 %vm164_vm0, %v147_v5  ;;  %v150_v10 = vld [vmem:[%s146_s10 + $0x30] sm:$0xff]  ;;  %p503_p13 = scmp.lt.s32.totalorder %s711_s12, %s501_s28  ;;  %p504_p1 = scmp.lt.s32.totalorder %s502_s29, %s496_s23 }
  0x51   : > { %393 = vmatprep.mubr.msk.f32.mxu1 %vm164_vm0, %v149_v6  ;;  %p499_p4 = pneg %p498_p3 }
  0x52   : > { %vm158_vm1 = vcmp.eq.s32.totalorder %v152_v1, %v157_v7  ;;  %vm159_vm2 = vcmp.eq.s32.totalorder %v153_v3, %v157_v7  ;;  %p505_p5 = por %p504_p1, %p503_p13 }
  0x53   : > { %vm396_vm3 = vmpackc.low %vm159_vm2, %vm158_vm1 }
  0x54   : > { %397 = vmatprep.subr.msk.bf16.mxu0 %vm396_vm3, %v570_v8  ;;  %400 = vmatprep.subr.msk.bf16.mxu1 %vm396_vm3, %v570_v8  ;;  %p506_p7 = pnand %p505_p5, %p499_p4 }
  0x55   : > { %399 = vmatpush3.bf16.msk.msra.mxu0 %vm396_vm3, %v570_v8  ;;  %401 = vmatpush3.bf16.msk.msra.mxu1 %vm396_vm3, %v570_v8 }
  0x58   : > { %391 = vmatmul.mubr.msk.f32.vlgmr.msra.gmra.mrb[0].mxu0 %vm164_vm0, %v148_v9  ;;  %394 = vmatmul.mubr.msk.f32.vlgmr.msra.gmra.mrb[0].mxu1 %vm164_vm0, %v150_v10 }
 0x12b   : > { %v392_v11 = vpop.f32.mrb[0].mxu0  ;;  %v395_v12 = vpop.f32.mrb[0].mxu1 }
 0x12c   : > { %264 = vst.msk [vmem:[%s141_s11 + $0x8] sm:$0xff] %vm262_vm4, %v392_v11  ;;  %266 = vst.msk [vmem:[%s141_s11 + $0x18] sm:$0xff] %vm262_vm4, %v395_v12  ;;  %v243_v13 = vpop.f32.mrb[1].mxu0  ;;  %v253_v14 = vpop.f32.mrb[1].mxu1 }
 0x12d   : > { %263 = vst.msk [vmem:[%s141_s11] sm:$0xff] %vm262_vm4, %v243_v13  ;;  %265 = vst.msk [vmem:[%s141_s11 + $0x10] sm:$0xff] %vm262_vm4, %v253_v14 }
 0x12e   : > { %509 = shalt.err (!%p506_p7)
}
 0x12f   : > { %s510_s3 = scalar_lea.hbm %s716_s21, 512  ;;  %s514_s4 = scalar_lea.hbm %s762_s2, 1024 }
 0x130   : > { %p511_p9 = scmp.ne.s32.totalorder %s716_s21, %s510_s3  ;;  %p515_p0 = scmp.lt.u32.totalorder %s716_s21, %s762_s2 }
 0x131   : > { %p516_p6 = scmp.lt.u32.totalorder %s514_s4, %s510_s3  ;;  %p518_p11 = scmp.lt.u32.totalorder %s510_s3, %s716_s21 }
 0x132   : > { %p512_p10 = pnand %p511_p9, %p769_p2 }
 0x133   : > { %p517_p8 = por %p516_p6, %p515_p0 }
 0x134   : > { %p513_p12 = pneg %p512_p10 }
 0x135   : > { %p519_p3 = por %p518_p11, %p517_p8 }
 0x137   : > { %p520_p4 = pnand %p519_p3, %p513_p12 }
 0x139   : > { %523 = shalt.err (!%p520_p4)
}
 0x13a   : > { %s572_s8 = smov 128   ;;  %s573_s10 = smov 8  }
 0x13b   : > { %404 = dma.vmem_to_hbm [thread:$0]  (%p769_p2), %s711_s12, 512, %s716_s21, %s268_s17, %s572_s8, %s572_s8, %s573_s10  }
 0x13c PF: > { %s296_s24 = sand.u32 1, %s552_s14   ;;  %p770_p13 = scmp.ne.s32.totalorder %s767_s26, 0 }
 0x13d   : > { %p771_p1 = scmp.ge.s32.totalorder %s564_s16, 2  ;;  %s297_s11 = scalar_lea.sflag [#allocation6], %s296_s24 }
 0x13f   : > { %p411_p5 = pnand %p771_p1, %p770_p13 }
 0x141   : > { %547 = dma.done.wait (!%p411_p5), %s297_s11, 512  }
 0x142   : > { %549 = vsyncadd (!%p411_p5), %s297_s11, 4294966784  ;;  %p21_p7 = scmp.ge.s32.totalorder %s617_s19, 4   ;;  %s772_s14 = smov %s556_s0 }
 0x143   : > { %s773_s0 = smov %s560_s15  ;;  %s774_s15 = smov %s629_s22 }
 0x144   : > { %s775_s16 = smov %s617_s19  ;;  %23 = sbr.rel (!%p21_p7) target bundleno = 20 (0x14), region = 70 }
 0x14b   :  { %302 = vsyncpa [#allocation5], 1 }
 0x14c   :  { %304 = vsyncpa [#allocation5 + $0x1], 1 }
 0x14d   :  { %305 = vsyncpa [#allocation6], 1 }
 0x14e   :  { %307 = vsyncpa [#allocation6 + $0x1], 1 }

</bundles_post_ra>
